<compile_context>
chip_gen: v6e
topology: v6e:2x2x1
jax: 0.10.0
libtpu: 0.0.40
codegen_flags: <defaults>
</compile_context>

<pallas_src>
import functools

import jax
import jax.numpy as jnp
from jax.experimental import pallas as pl
from jax.experimental.pallas import tpu as pltpu


def _round_up(x, m):
    return ((x + m - 1) // m) * m


def _cdiv(a, b):
    return (a + b - 1) // b


# ----------------------------------------------------------------------------
# Kernel 1: packed per-node 2-layer MLP (mlp_src and mlp_dst in one matmul
# pair).  x:[TN,D](bf16) @ W1p:[D,2H](bf16) -> +b1, ReLU -> @ W2p:[2H,2](bf16)
# -> scores [TN,2] f32 (col 0 = src score, col 1 = dst score; 2nd-layer bias
# folded into the edge slab later).
# ----------------------------------------------------------------------------
def _node_mlp_kernel(x_ref, w1_ref, b1_ref, w2_ref, o_ref):
    h = jnp.maximum(
        jnp.dot(x_ref[...], w1_ref[...], preferred_element_type=jnp.float32)
        + b1_ref[...], 0.0)                                           # [TN, 2H] f32
    o_ref[...] = jnp.dot(h.astype(w2_ref.dtype), w2_ref[...],
                         preferred_element_type=jnp.float32)          # [TN, 2]


def node_scores(node_emb, w1p, b1p, w2p, *, max_tile=2048, min_split=512):
    N, D = node_emb.shape
    H2 = w1p.shape[1]

    n16 = _round_up(N, 16)
    n_blocks = _cdiv(n16, max_tile)
    if n_blocks == 1 and n16 >= 2 * min_split:
        n_blocks = 2                          # keep both v7x TensorCores busy
    tile_n = _round_up(_cdiv(n16, n_blocks), 16)
    n_pad = tile_n * n_blocks

    x = node_emb.astype(jnp.bfloat16)
    if n_pad != N:
        x = jnp.pad(x, ((0, n_pad - N), (0, 0)))

    out = pl.pallas_call(
        _node_mlp_kernel,
        grid=(n_blocks,),
        in_specs=[
            pl.BlockSpec((tile_n, D), lambda i: (i, 0)),   # node_emb tile (bf16)
            pl.BlockSpec((D, H2), lambda i: (0, 0)),       # packed W1 (bf16)
            pl.BlockSpec((1, H2), lambda i: (0, 0)),       # packed b1 (f32)
            pl.BlockSpec((H2, 2), lambda i: (0, 0)),       # block-diag W2 (bf16)
        ],
        out_specs=pl.BlockSpec((tile_n, 2), lambda i: (i, 0)),
        out_shape=jax.ShapeDtypeStruct((n_pad, 2), jnp.float32),
        compiler_params=pltpu.CompilerParams(
            dimension_semantics=("parallel",)),
    )(x, w1p, b1p, w2p)
    return out[:N]


# ----------------------------------------------------------------------------
# Kernel 2: per-edge gumbel-sigmoid gate on a [rows, 128] lane/sublane-dense
# slab plus a matching uniform-noise slab.  Emits aug and a per-block partial
# sum of (1 - aug) (padded tail masked only in the LAST block).
# ----------------------------------------------------------------------------
def _gate_kernel(w_ref, u_ref, aug_ref, psum_ref, *,
                 inv_temp, bias, n_edges, block_rows):
    i = pl.program_id(0)
    last = pl.num_programs(0) - 1

    u = u_ref[...]
    eps = (bias - (1.0 - bias)) * u + (1.0 - bias)
    # log(eps) - log(1-eps) == log(eps/(1-eps)); multiply by precomputed 1/T.
    gate = (jnp.log(eps / (1.0 - eps)) + w_ref[...]) * inv_temp
    aug = jax.nn.sigmoid(gate)
    aug_ref[...] = aug

    @pl.when(i != last)
    def _():
        # Full block: no padding possible, plain reduction.
        psum_ref[...] = jnp.broadcast_to(jnp.sum(1.0 - aug), psum_ref.shape)

    @pl.when(i == last)
    def _():
        # Last block: mask out the padded tail beyond the true edge count.
        rows, lanes = aug.shape
        rid = jax.lax.broadcasted_iota(jnp.int32, (rows, lanes), 0)
        lid = jax.lax.broadcasted_iota(jnp.int32, (rows, lanes), 1)
        lin = (i * block_rows + rid) * lanes + lid
        drop = jnp.where(lin < n_edges, 1.0 - aug, 0.0)
        psum_ref[...] = jnp.broadcast_to(jnp.sum(drop), psum_ref.shape)


def _gate_tiling(n_edges, *, max_block_rows=2048, min_split_rows=512):
    rows = _round_up(_cdiv(n_edges, 128), 8)         # sublane-aligned rows
    n_blocks = _cdiv(rows, max_block_rows)
    if n_blocks == 1 and rows >= 2 * min_split_rows:
        n_blocks = 2                                  # v7x: use both TCs
    block_rows = _round_up(_cdiv(rows, n_blocks), 8)
    rows_padded = block_rows * n_blocks
    return rows_padded, block_rows, n_blocks


def edge_gate(w_slab, noise_slab, *, n_edges, block_rows, n_blocks,
              temperature=0.5, bias=1e-4):
    rows_padded = w_slab.shape[0]
    kernel = functools.partial(
        _gate_kernel,
        inv_temp=1.0 / float(temperature),
        bias=float(bias),
        n_edges=n_edges,
        block_rows=block_rows)

    aug2d, psum = pl.pallas_call(
        kernel,
        grid=(n_blocks,),
        in_specs=[pl.BlockSpec((block_rows, 128), lambda i: (i, 0)),
                  pl.BlockSpec((block_rows, 128), lambda i: (i, 0))],
        out_specs=(pl.BlockSpec((block_rows, 128), lambda i: (i, 0)),
                   pl.BlockSpec((8, 128), lambda i: (i, 0))),
        out_shape=(jax.ShapeDtypeStruct((rows_padded, 128), jnp.float32),
                   jax.ShapeDtypeStruct((n_blocks * 8, 128), jnp.float32)),
        compiler_params=pltpu.CompilerParams(
            dimension_semantics=("parallel",),
            vmem_limit_bytes=32 * 1024 * 1024),
    )(w_slab, noise_slab)

    # Each block broadcast its partial sum over an (8,128) block; undo that.
    reg = jnp.sum(psum) / (8.0 * 128.0 * n_edges)
    return reg, aug2d


# ----------------------------------------------------------------------------
# Parameter init (xavier_uniform_ weights, zero bias), deterministic.
# Weights are stored transposed vs. PyTorch ([in, out]) so kernels do x @ W.
# ----------------------------------------------------------------------------
def xavier_uniform(key, fan_in, fan_out):
    limit = jnp.sqrt(6.0 / (fan_in + fan_out))
    return jax.random.uniform(key, (fan_in, fan_out), jnp.float32,
                              -limit, limit)


def init_drop_learner(key, node_dim, hidden):
    ks = jax.random.split(key, 6)
    # mlp_con exists in __init__ but is unused when concat=False; initialized
    # anyway for fidelity with the PyTorch module.
    p = {
        "ws1": xavier_uniform(ks[0], node_dim, hidden),
        "bs1": jnp.zeros((1, hidden), jnp.float32),
        "ws2": xavier_uniform(ks[1], hidden, 1),
        "bs2": jnp.zeros((1, 1), jnp.float32),
        "wd1": xavier_uniform(ks[2], node_dim, hidden),
        "bd1": jnp.zeros((1, hidden), jnp.float32),
        "wd2": xavier_uniform(ks[3], hidden, 1),
        "bd2": jnp.zeros((1, 1), jnp.float32),
        "wc1": xavier_uniform(ks[4], node_dim, hidden),
        "bc1": jnp.zeros((1, hidden), jnp.float32),
        "wc2": xavier_uniform(ks[5], hidden, 1),
        "bc2": jnp.zeros((1, 1), jnp.float32),
    }
    return p


def pack_drop_learner_params(params):
    """One-time packing: src/dst MLPs share one [D,2H] matmul and one
    block-diagonal [2H,2] matmul; second-layer biases fold to a scalar."""
    H = params["ws1"].shape[1]
    w1p = jnp.concatenate([params["ws1"], params["wd1"]],
                          axis=1).astype(jnp.bfloat16)                # [D, 2H]
    b1p = jnp.concatenate([params["bs1"], params["bd1"]],
                          axis=1).astype(jnp.float32)                 # [1, 2H]
    w2p = jnp.zeros((2 * H, 2), jnp.float32)
    w2p = w2p.at[:H, 0].set(params["ws2"][:, 0])
    w2p = w2p.at[H:, 1].set(params["wd2"][:, 0])
    w2p = w2p.astype(jnp.bfloat16)                                    # [2H, 2]
    b2 = params["bs2"][0, 0] + params["bd2"][0, 0]                    # scalar
    return {"w1p": w1p, "b1p": b1p, "w2p": w2p, "b2": b2}


# ----------------------------------------------------------------------------
# Forward wrapper.  Graph gather / padding stays as fused XLA glue that
# produces the lane-dense edge slab directly (no [E] intermediate pass).
# ----------------------------------------------------------------------------
def drop_learner_forward(packed, node_emb, src_idx, dst_idx, noise_key,
                         temperature=0.5):
    scores = node_scores(node_emb, packed["w1p"], packed["b1p"],
                         packed["w2p"])                               # [N, 2]

    E = src_idx.shape[0]
    rows_padded, block_rows, n_blocks = _gate_tiling(E)
    e_pad = rows_padded * 128

    # TODO(synk): the DGL u_add_v gather is data-dependent per-edge indexing
    # with no clean Pallas equivalent; it stays as an XLA gather fused
    # directly into the padded [rows, 128] slab feeding the gate kernel.
    src_pad = jnp.pad(src_idx, (0, e_pad - E))        # pad with node 0 (valid)
    dst_pad = jnp.pad(dst_idx, (0, e_pad - E))
    w_slab = (scores[src_pad, 0] + scores[dst_pad, 1]
              + packed["b2"]).reshape(rows_padded, 128)

    noise = jax.random.uniform(noise_key, (rows_padded, 128), jnp.float32)

    reg, aug2d = edge_gate(w_slab, noise, n_edges=E, block_rows=block_rows,
                           n_blocks=n_blocks, temperature=temperature)
    aug = aug2d.reshape(-1)[:E]
    aug_edge_weight = aug[:, None, None]              # [E, 1, 1]
    return reg, aug_edge_weight


if __name__ == "__main__":
    NODE_DIM = 32     # node_dim
    HIDDEN = 64       # mlp_edge_model_dim (default)
    N_NODES = 64
    N_EDGES = 256

    key = jax.random.PRNGKey(0)
    k_param, k_x, k_src, k_dst, k_noise = jax.random.split(key, 5)

    params = init_drop_learner(k_param, NODE_DIM, HIDDEN)
    packed = pack_drop_learner_params(params)
    node_emb = jax.random.normal(k_x, (N_NODES, NODE_DIM), jnp.float32)
    src_idx = jax.random.randint(k_src, (N_EDGES,), 0, N_NODES)
    dst_idx = jax.random.randint(k_dst, (N_EDGES,), 0, N_NODES)

    fwd = jax.jit(functools.partial(drop_learner_forward, temperature=0.5))
    reg, aug_edge_weight = fwd(packed, node_emb, src_idx, dst_idx, k_noise)
    jax.block_until_ready((reg, aug_edge_weight))

    assert aug_edge_weight.shape == (N_EDGES, 1, 1)
    assert reg.shape == ()
    assert bool(jnp.all((aug_edge_weight >= 0.0) & (aug_edge_weight <= 1.0)))
    assert bool(jnp.isfinite(reg))
    print("KERNEL_OK")
</pallas_src>

<mosaic_0001>
module attributes {stable_mosaic.version = 11 : i64} {
  func.func @_node_mlp_kernel(%arg0: i32, %arg1: memref<64x32xbf16, #tpu.memory_space<vmem>>, %arg2: memref<32x128xbf16, #tpu.memory_space<vmem>>, %arg3: memref<1x128xf32, #tpu.memory_space<vmem>>, %arg4: memref<128x2xbf16, #tpu.memory_space<vmem>>, %arg5: memref<64x2xf32, #tpu.memory_space<vmem>>) attributes {dimension_semantics = [#tpu.dimension_semantics<parallel>], iteration_bounds = array<i64: 1>, scalar_prefetch = 0 : i64, scratch_operands = 0 : i64, tpu.core_type = #tpu.core_type<tc>, window_params = [{transform_indices = @transform_0, window_bounds = array<i64: 64, 32>}, {pipeline_mode = #tpu.pipeline_mode<synchronous>, transform_indices = @transform_1, window_bounds = array<i64: 32, 128>}, {pipeline_mode = #tpu.pipeline_mode<synchronous>, transform_indices = @transform_2, window_bounds = array<i64: 1, 128>}, {pipeline_mode = #tpu.pipeline_mode<synchronous>, transform_indices = @transform_3, window_bounds = array<i64: 128, 2>}, {transform_indices = @transform_4, window_bounds = array<i64: 64, 2>}]} {
    %c0 = arith.constant 0 : index
    %c0_0 = arith.constant 0 : index
    %0 = vector.load %arg1[%c0, %c0_0] : memref<64x32xbf16, #tpu.memory_space<vmem>>, vector<64x32xbf16>
    %c0_1 = arith.constant 0 : index
    %c0_2 = arith.constant 0 : index
    %1 = vector.load %arg2[%c0_1, %c0_2] : memref<32x128xbf16, #tpu.memory_space<vmem>>, vector<32x128xbf16>
    %cst = arith.constant dense<0.000000e+00> : vector<64x128xf32>
    %2 = tpu.matmul %0, %1, %cst {dimension_numbers = #tpu.dot_dimension_numbers<[1], [0], [0], [1], [0, 0, 1, 1], [], []>} : vector<64x32xbf16>, vector<32x128xbf16>, vector<64x128xf32> -> vector<64x128xf32>
    %c0_3 = arith.constant 0 : index
    %c0_4 = arith.constant 0 : index
    %3 = vector.load %arg3[%c0_3, %c0_4] : memref<1x128xf32, #tpu.memory_space<vmem>>, vector<1x128xf32>
    %4 = vector.broadcast %3 : vector<1x128xf32> to vector<64x128xf32>
    %5 = arith.addf %2, %4 : vector<64x128xf32>
    %cst_5 = arith.constant 0.000000e+00 : f32
    %6 = vector.broadcast %cst_5 : f32 to vector<64x128xf32>
    %7 = arith.maximumf %5, %6 : vector<64x128xf32>
    %8 = arith.truncf %7 : vector<64x128xf32> to vector<64x128xbf16>
    %c0_6 = arith.constant 0 : index
    %c0_7 = arith.constant 0 : index
    %9 = vector.load %arg4[%c0_6, %c0_7] : memref<128x2xbf16, #tpu.memory_space<vmem>>, vector<128x2xbf16>
    %cst_8 = arith.constant dense<0.000000e+00> : vector<64x2xf32>
    %10 = tpu.matmul %8, %9, %cst_8 {dimension_numbers = #tpu.dot_dimension_numbers<[1], [0], [0], [1], [0, 0, 1, 1], [], []>} : vector<64x128xbf16>, vector<128x2xbf16>, vector<64x2xf32> -> vector<64x2xf32>
    %c0_9 = arith.constant 0 : index
    %c0_10 = arith.constant 0 : index
    %11 = vector.load %arg5[%c0_9, %c0_10] : memref<64x2xf32, #tpu.memory_space<vmem>>, vector<64x2xf32>
    tpu.vector_store %arg5[%c0_9, %c0_10], %10 {strides = array<i32>} : memref<64x2xf32, #tpu.memory_space<vmem>>, vector<64x2xf32>,
    return
  }
  func.func @transform_0(%arg0: i32) -> (i32, i32) {
    %c0_i32 = arith.constant 0 : i32
    %c0_i32_0 = arith.constant 0 : i32
    return %arg0, %c0_i32 : i32, i32
  }
  func.func @transform_1(%arg0: i32) -> (i32, i32) {
    %c0_i32 = arith.constant 0 : i32
    %c0_i32_0 = arith.constant 0 : i32
    %c0_i32_1 = arith.constant 0 : i32
    return %c0_i32, %c0_i32_0 : i32, i32
  }
  func.func @transform_2(%arg0: i32) -> (i32, i32) {
    %c0_i32 = arith.constant 0 : i32
    %c0_i32_0 = arith.constant 0 : i32
    %c0_i32_1 = arith.constant 0 : i32
    return %c0_i32, %c0_i32_0 : i32, i32
  }
  func.func @transform_3(%arg0: i32) -> (i32, i32) {
    %c0_i32 = arith.constant 0 : i32
    %c0_i32_0 = arith.constant 0 : i32
    %c0_i32_1 = arith.constant 0 : i32
    return %c0_i32, %c0_i32_0 : i32, i32
  }
  func.func @transform_4(%arg0: i32) -> (i32, i32) {
    %c0_i32 = arith.constant 0 : i32
    %c0_i32_0 = arith.constant 0 : i32
    return %arg0, %c0_i32 : i32, i32
  }
}

module attributes {stable_mosaic.version = 11 : i64} {
  func.func @_gate_kernel(%arg0: i32, %arg1: memref<8x128xf32, #tpu.memory_space<vmem>>, %arg2: memref<8x128xf32, #tpu.memory_space<vmem>>, %arg3: memref<8x128xf32, #tpu.memory_space<vmem>>, %arg4: memref<8x128xf32, #tpu.memory_space<vmem>>) attributes {dimension_semantics = [#tpu.dimension_semantics<parallel>], iteration_bounds = array<i64: 1>, scalar_prefetch = 0 : i64, scratch_operands = 0 : i64, tpu.core_type = #tpu.core_type<tc>, window_params = [{transform_indices = @transform_0, window_bounds = array<i64: 8, 128>}, {transform_indices = @transform_1, window_bounds = array<i64: 8, 128>}, {transform_indices = @transform_2, window_bounds = array<i64: 8, 128>}, {transform_indices = @transform_3, window_bounds = array<i64: 8, 128>}]} {
    %c0 = arith.constant 0 : index
    %c0_0 = arith.constant 0 : index
    %0 = vector.load %arg2[%c0, %c0_0] : memref<8x128xf32, #tpu.memory_space<vmem>>, vector<8x128xf32>
    %cst = arith.constant -9.998000e-01 : f32
    %1 = vector.broadcast %cst : f32 to vector<8x128xf32>
    %2 = arith.mulf %1, %0 : vector<8x128xf32>
    %cst_1 = arith.constant 0.999899983 : f32
    %3 = vector.broadcast %cst_1 : f32 to vector<8x128xf32>
    %4 = arith.addf %2, %3 : vector<8x128xf32>
    %cst_2 = arith.constant 1.000000e+00 : f32
    %5 = vector.broadcast %cst_2 : f32 to vector<8x128xf32>
    %6 = arith.subf %5, %4 : vector<8x128xf32>
    %7 = arith.divf %4, %6 : vector<8x128xf32>
    %8 = math.log %7 : vector<8x128xf32>
    %c0_3 = arith.constant 0 : index
    %c0_4 = arith.constant 0 : index
    %9 = vector.load %arg1[%c0_3, %c0_4] : memref<8x128xf32, #tpu.memory_space<vmem>>, vector<8x128xf32>
    %10 = arith.addf %8, %9 : vector<8x128xf32>
    %cst_5 = arith.constant 2.000000e+00 : f32
    %11 = vector.broadcast %cst_5 : f32 to vector<8x128xf32>
    %12 = arith.mulf %10, %11 : vector<8x128xf32>
    %13 = arith.negf %12 : vector<8x128xf32>
    %14 = math.exp %13 : vector<8x128xf32>
    %cst_6 = arith.constant 1.000000e+00 : f32
    %15 = vector.broadcast %cst_6 : f32 to vector<8x128xf32>
    %16 = arith.addf %15, %14 : vector<8x128xf32>
    %17 = arith.divf %15, %16 : vector<8x128xf32>
    %c0_7 = arith.constant 0 : index
    %c0_8 = arith.constant 0 : index
    %18 = vector.load %arg3[%c0_7, %c0_8] : memref<8x128xf32, #tpu.memory_space<vmem>>, vector<8x128xf32>
    tpu.vector_store %arg3[%c0_7, %c0_8], %17 {strides = array<i32>} : memref<8x128xf32, #tpu.memory_space<vmem>>, vector<8x128xf32>,
    %c0_i32 = arith.constant 0 : i32
    %19 = arith.cmpi ne, %arg0, %c0_i32 : i32
    %20 = arith.extui %19 : i1 to i32
    %c0_i32_9 = arith.constant 0 : i32
    %21 = arith.cmpi ne, %20, %c0_i32_9 : i32
    scf.if %21 {
      %cst_12 = arith.constant 1.000000e+00 : f32
      %25 = vector.broadcast %cst_12 : f32 to vector<8x128xf32>
      %26 = arith.subf %25, %17 : vector<8x128xf32>
      %27 = vector.shape_cast %26 : vector<8x128xf32> to vector<1x8x128xf32>
      %cst_13 = arith.constant dense<0.000000e+00> : vector<1xf32>
      %28 = vector.multi_reduction <add>, %27, %cst_13 [1, 2] : vector<1x8x128xf32> to vector<1xf32>
      %29 = vector.shape_cast %28 : vector<1xf32> to vector<1x1x1xf32>
      %30 = vector.extract %29[0, 0, 0] : f32 from vector<1x1x1xf32>
      %31 = vector.broadcast %30 : f32 to vector<8x128xf32>
      %c0_14 = arith.constant 0 : index
      %c0_15 = arith.constant 0 : index
      %32 = vector.load %arg4[%c0_14, %c0_15] : memref<8x128xf32, #tpu.memory_space<vmem>>, vector<8x128xf32>
      tpu.vector_store %arg4[%c0_14, %c0_15], %31 {strides = array<i32>} : memref<8x128xf32, #tpu.memory_space<vmem>>, vector<8x128xf32>,
    } else {
    }
    %c0_i32_10 = arith.constant 0 : i32
    %22 = arith.cmpi eq, %arg0, %c0_i32_10 : i32
    %23 = arith.extui %22 : i1 to i32
    %c0_i32_11 = arith.constant 0 : i32
    %24 = arith.cmpi ne, %23, %c0_i32_11 : i32
    scf.if %24 {
      %25 = tpu.iota {dimensions = array<i32: 0>} : vector<8x128xi32>
      %26 = tpu.iota {dimensions = array<i32: 1>} : vector<8x128xi32>
      %c8_i32 = arith.constant 8 : i32
      %27 = arith.muli %arg0, %c8_i32 : i32
      %28 = vector.broadcast %27 : i32 to vector<8x128xi32>
      %29 = arith.addi %28, %25 : vector<8x128xi32>
      %c128_i32 = arith.constant 128 : i32
      %30 = vector.broadcast %c128_i32 : i32 to vector<8x128xi32>
      %31 = arith.muli %29, %30 : vector<8x128xi32>
      %32 = arith.addi %31, %26 : vector<8x128xi32>
      %c256_i32 = arith.constant 256 : i32
      %33 = vector.broadcast %c256_i32 : i32 to vector<8x128xi32>
      %34 = arith.cmpi slt, %32, %33 : vector<8x128xi32>
      %cst_12 = arith.constant 1.000000e+00 : f32
      %35 = vector.broadcast %cst_12 : f32 to vector<8x128xf32>
      %36 = arith.subf %35, %17 : vector<8x128xf32>
      %cst_13 = arith.constant 0.000000e+00 : f32
      %37 = vector.broadcast %cst_13 : f32 to vector<8x128xf32>
      %38 = arith.select %34, %36, %37 : vector<8x128xi1>, vector<8x128xf32>
      %39 = vector.shape_cast %38 : vector<8x128xf32> to vector<1x8x128xf32>
      %cst_14 = arith.constant dense<0.000000e+00> : vector<1xf32>
      %40 = vector.multi_reduction <add>, %39, %cst_14 [1, 2] : vector<1x8x128xf32> to vector<1xf32>
      %41 = vector.shape_cast %40 : vector<1xf32> to vector<1x1x1xf32>
      %42 = vector.extract %41[0, 0, 0] : f32 from vector<1x1x1xf32>
      %43 = vector.broadcast %42 : f32 to vector<8x128xf32>
      %c0_15 = arith.constant 0 : index
      %c0_16 = arith.constant 0 : index
      %44 = vector.load %arg4[%c0_15, %c0_16] : memref<8x128xf32, #tpu.memory_space<vmem>>, vector<8x128xf32>
      tpu.vector_store %arg4[%c0_15, %c0_16], %43 {strides = array<i32>} : memref<8x128xf32, #tpu.memory_space<vmem>>, vector<8x128xf32>,
    } else {
    }
    return
  }
  func.func @transform_0(%arg0: i32) -> (i32, i32) {
    %c0_i32 = arith.constant 0 : i32
    %c0_i32_0 = arith.constant 0 : i32
    return %arg0, %c0_i32 : i32, i32
  }
  func.func @transform_1(%arg0: i32) -> (i32, i32) {
    %c0_i32 = arith.constant 0 : i32
    %c0_i32_0 = arith.constant 0 : i32
    return %arg0, %c0_i32 : i32, i32
  }
  func.func @transform_2(%arg0: i32) -> (i32, i32) {
    %c0_i32 = arith.constant 0 : i32
    %c0_i32_0 = arith.constant 0 : i32
    return %arg0, %c0_i32 : i32, i32
  }
  func.func @transform_3(%arg0: i32) -> (i32, i32) {
    %c0_i32 = arith.constant 0 : i32
    %c0_i32_0 = arith.constant 0 : i32
    return %arg0, %c0_i32 : i32, i32
  }
}

</mosaic_0001>

<bundles_post_ra>
// kernel: drop_learner_forward.3
= control target key start
LH: loop header
LB: loop body
LE: loop exit
PB: predicated region body
PF: predicated region fallthrough
CT: control target
= control target key end

     0   :  { %v51_v13 = vlaneseq  ;;  %s125_s1 = inlined_call_operand.vmem [shape: f32[8,128], index: 1, kind: input, shape index: {}]   ;;  %s126_s0 = inlined_call_operand.vmem [shape: f32[8,128], index: 0, kind: input, shape index: {}]   ;;  %s127_s2 = inlined_call_operand.vmem [shape: f32[8,128], index: 2, kind: output, shape index: {0}]   ;;  %s128_s3 = inlined_call_operand.vmem [shape: f32[8,128], index: 3, kind: output, shape index: {1}]  }
   0x1   :  { %v13_v0 = vld [vmem:[%s125_s1] sm:$0xff] }
   0x2   :  { %v14_v1 = vmul.f32 -0.9998, %v13_v0  ;;  %v21_v7 = vld [vmem:[%s126_s0] sm:$0xff]  ;;  %v52_v15 = vshrl.u32 %v51_v13, 7  ;;  %v54_v16 = vand.u32 127, %v51_v13 }
   0x4   :  { %v15_v2 = vadd.f32 0.9999, %v14_v1  ;;  %v58_v17 = vmul.u32 128, %v52_v15 }
   0x6   :  { %v16_v3 = vsub.f32 1.0, %v15_v2  ;;  %v59_v18 = vadd.s32 %v58_v17, %v54_v16 }
   0x8   :  { %85 = vrcp.f32 %v16_v3  ;;  %vm60_vm0 = vcmp.lt.s32.totalorder %v59_v18, 256 }
  0x15   :  { %v86_v4 = vpop.eup %85 }
  0x16   :  { %v18_v5 = vmul.f32 %v86_v4, %v15_v2 }
  0x18   :  { %87 = vlog2.f32 %v18_v5 }
  0x25   :  { %v88_v6 = vpop.eup %87 }
  0x26   :  { %v20_v8 = vmul.f32 0.6931472, %v88_v6 }
  0x28   :  { %v22_v9 = vadd.f32 %v21_v7, %v20_v8 }
  0x2a   :  { %v82_v10 = vmul.f32 -2.0, %v22_v9 }
  0x2c   :  { %v25_v11 = vmul.f32 1.442695, %v82_v10 }
  0x2e   :  { %89 = vpow2.f32 %v25_v11 }
  0x3b   :  { %v90_v12 = vpop.eup %89 }
  0x3c   :  { %v27_v14 = vadd.f32 1.0, %v90_v12 }
  0x3e   :  { %91 = vrcp.f32 %v27_v14 }
  0x4b   :  { %v92_v19 = vpop.eup %91 }
  0x4c   :  { %30 = vst [vmem:[%s127_s2] sm:$0xff] %v92_v19  ;;  %v61_v20 = vsub.f32 1.0, %v92_v19 }
  0x4e   :  { %v62_v21 = vsel %vm60_vm0, %v61_v20, 0.0 }
  0x4f   :  { %63 = vadd.xlane.f32.xlu0 %v62_v21 }
  0xd8   :  { %v64_v22 = vpop.xlane.xlu0 %63 }
  0xd9   :  { %v65_v23 = vrot.slane %v64_v22, 4 }
  0xdb   :  { %v66_v24 = vadd.f32 %v65_v23, %v64_v22 }
  0xdd   :  { %v67_v25 = vrot.slane %v66_v24, 2 }
  0xdf   :  { %v68_v26 = vadd.f32 %v67_v25, %v66_v24 }
  0xe1   :  { %v69_v27 = vrot.slane %v68_v26, 1 }
  0xe3   :  { %v70_v28 = vadd.f32 %v69_v27, %v68_v26 }
  0xe5   :  { %83 = vpush %v70_v28 }
 0x116   :  { %s84_s0 = spop %83 }
 0x117   :  { %v72_v29 = vstv %s84_s0 }
 0x118   :  { %73 = vst [vmem:[%s128_s3] sm:$0xff] %v72_v29 }

// kernel: drop_learner_forward.2
= control target key start
LH: loop header
LB: loop body
LE: loop exit
PB: predicated region body
PF: predicated region fallthrough
CT: control target
= control target key end

     0   :  { %vm69_vm0 = vcmask 261120   ;;  %vm288_vm1 = vcmask 15360   ;;  %s494_s1 = inlined_call_operand.vmem [shape: bf16[32,128], index: 1, kind: input, shape index: {}]   ;;  %s495_s0 = inlined_call_operand.vmem [shape: bf16[64,32], index: 0, kind: input, shape index: {}]   ;;  %s496_s3 = inlined_call_operand.vmem [shape: bf16[128,2], index: 3, kind: input, shape index: {}]   ;;  %s497_s2 = inlined_call_operand.vmem [shape: f32[1,128], index: 2, kind: input, shape index: {}]   ;;  %s498_s4 = inlined_call_operand.vmem [shape: f32[64,2], index: 4, kind: output, shape index: {}]  }
   0x1   :  { %v374_v0 = vld [vmem:[%s494_s1 + $0x8] sm:$0xff]   ;;  %v375_v1 = vld [vmem:[%s494_s1] sm:$0xff]   ;;  %v378_v4 = vld [vmem:[%s495_s0 + $0x10] sm:$0xff]  }
   0x2   :  { %338 = vmatprep.subr.bf16.mxu0 %v374_v0  ;;  %v376_v2 = vld [vmem:[%s495_s0] sm:$0xff]   ;;  %v377_v3 = vld [vmem:[%s495_s0 + $0x8] sm:$0xff]   ;;  %v380_v5 = vld [vmem:[%s496_s3 + $0x38] sm:$0xff]  }
   0x3   :  { %339 = vmatpush3.bf16.msra.mxu0 %v374_v0  ;;  %342 = vmatprep.mubr.msk.bf16.mxu0 %vm69_vm0, %v376_v2  ;;  %v381_v6 = vld [vmem:[%s496_s3 + $0x30] sm:$0xff]   ;;  %v382_v7 = vld [vmem:[%s496_s3 + $0x28] sm:$0xff]   ;;  %v379_v8 = vld [vmem:[%s495_s0 + $0x18] sm:$0xff]  }
   0x4   :  { %340 = vmatprep.subr.bf16.mxu0 %v375_v1  ;;  %350 = vmatprep.subr.bf16.mxu1 %v380_v5  ;;  %v383_v9 = vld [vmem:[%s496_s3 + $0x20] sm:$0xff]   ;;  %v384_v10 = vld [vmem:[%s496_s3 + $0x18] sm:$0xff]   ;;  %v385_v11 = vld [vmem:[%s496_s3 + $0x10] sm:$0xff]  }
   0x5   :  { %351 = vmatpush3.bf16.msra.mxu1 %v380_v5  ;;  %v386_v12 = vld [vmem:[%s496_s3 + $0x8] sm:$0xff]   ;;  %v387_v13 = vld [vmem:[%s496_s3] sm:$0xff]  }
   0x6   :  { %352 = vmatprep.subr.bf16.mxu1 %v381_v6  ;;  %v301_v16 = vld [vmem:[%s497_s2] ss:$0 sm:$0xff] }
   0x7   :  { %341 = vmatpush3.bf16.msra.mxu0 %v375_v1 }
   0x9   :  { %353 = vmatpush3.bf16.msra.mxu1 %v381_v6 }
   0xa   :  { %343 = vmatmul.mubr.msk.bf16.vlgmr.msra.gmra.mxu0 %vm69_vm0, %v377_v3  ;;  %354 = vmatprep.subr.bf16.mxu1 %v382_v7 }
   0xb   :  { %346 = vmatprep.mubr.msk.bf16.mxu0 %vm69_vm0, %v378_v4 }
   0xd   :  { %355 = vmatpush3.bf16.msra.mxu1 %v382_v7 }
   0xe   :  { %356 = vmatprep.subr.bf16.mxu1 %v383_v9 }
  0x11   :  { %357 = vmatpush3.bf16.msra.mxu1 %v383_v9 }
  0x12   :  { %347 = vmatmul.mubr.msk.bf16.gmra.mxu0 %vm69_vm0, %v379_v8  ;;  %358 = vmatprep.subr.bf16.mxu1 %v384_v10 }
  0x15   :  { %359 = vmatpush3.bf16.msra.mxu1 %v384_v10 }
  0x16   :  { %360 = vmatprep.subr.bf16.mxu1 %v385_v11 }
  0x19   :  { %361 = vmatpush3.bf16.msra.mxu1 %v385_v11 }
  0x1a   :  { %362 = vmatprep.subr.bf16.mxu1 %v386_v12 }
  0x1d   :  { %363 = vmatpush3.bf16.msra.mxu1 %v386_v12 }
  0x1e   :  { %364 = vmatprep.subr.bf16.mxu1 %v387_v13 }
  0x21   :  { %365 = vmatpush3.bf16.msra.mxu1 %v387_v13 }
  0xca   :  { %v344_v14 = vpop.f32.mrf.mxu0 }
  0xcb   :  { %v125_v20 = vadd.f32 %v344_v14, %v301_v16 }
  0xcc   :  { %v116_v15 = vpop.f32.mrf.mxu0 }
  0xcd   :  { %v117_v18 = vadd.f32 %v301_v16, %v116_v15  ;;  %v149_v27 = vmax.f32 %v125_v20, 0.0 }
  0xce   :  { %v345_v17 = vpop.f32.mrf.mxu0 }
  0xcf   :  { %v128_v19 = vadd.f32 %v345_v17, %v301_v16  ;;  %v147_v25 = vmax.f32 %v117_v18, 0.0 }
  0xd0   :  { %v119_v21 = vpop.f32.mrf.mxu0 }
  0xd1   :  { %v120_v22 = vadd.f32 %v301_v16, %v119_v21  ;;  %v150_v23 = vmax.f32 %v128_v19, 0.0 }
  0xd2   :  { %v348_v24 = vpop.f32.mrf.mxu0 }
  0xd3   :  { %v148_v26 = vmax.f32 %v120_v22, 0.0  ;;  %v156_v30 = vpack.c.bf16 %v150_v23, %v149_v27  ;;  %v141_v34 = vadd.f32 %v348_v24, %v301_v16 }
  0xd4   :  { %v132_v28 = vpop.f32.mrf.mxu0 }
  0xd5   :  { %v155_v29 = vpack.c.bf16 %v148_v26, %v147_v25  ;;  %v133_v32 = vadd.f32 %v301_v16, %v132_v28  ;;  %v153_v40 = vmax.f32 %v141_v34, 0.0 }
  0xd6   :  { %v349_v31 = vpop.f32.mrf.mxu0 }
  0xd7   :  { %v144_v33 = vadd.f32 %v349_v31, %v301_v16  ;;  %366 = vmatprep.mubr.bf16.mxu1 %v155_v29  ;;  %v151_v38 = vmax.f32 %v133_v32, 0.0 }
  0xd8   :  { %v135_v35 = vpop.f32.mrf.mxu0  ;;  %367 = vmatmul.mubr.bf16.vlgmr.msra.gmra.mxu1 %v156_v30 }
  0xd9   :  { %v136_v36 = vadd.f32 %v301_v16, %v135_v35  ;;  %v154_v37 = vmax.f32 %v144_v33, 0.0 }
  0xdb   :  { %v152_v39 = vmax.f32 %v136_v36, 0.0  ;;  %v158_v42 = vpack.c.bf16 %v154_v37, %v153_v40 }
  0xdd   :  { %v157_v41 = vpack.c.bf16 %v152_v39, %v151_v38 }
  0xdf   :  { %370 = vmatprep.mubr.bf16.mxu1 %v157_v41 }
  0xe0   :  { %371 = vmatmul.mubr.bf16.gmra.mxu1 %v158_v42 }
 0x198   :  { %v368_v43 = vpop.f32.mrf.mxu1 }
 0x199   :  { %291 = vst.msk [vmem:[%s498_s4 + $0x10] sm:$0xff] %vm288_vm1, %v368_v43 }
 0x19a   :  { %v257_v44 = vpop.f32.mrf.mxu1 }
 0x19b   :  { %289 = vst.msk [vmem:[%s498_s4] sm:$0xff] %vm288_vm1, %v257_v44 }
 0x19c   :  { %v369_v45 = vpop.f32.mrf.mxu1 }
 0x19d   :  { %292 = vst.msk [vmem:[%s498_s4 + $0x18] sm:$0xff] %vm288_vm1, %v369_v45 }
 0x19e   :  { %v260_v46 = vpop.f32.mrf.mxu1 }
 0x19f   :  { %290 = vst.msk [vmem:[%s498_s4 + $0x8] sm:$0xff] %vm288_vm1, %v260_v46 }
 0x1a0   :  { %v372_v47 = vpop.f32.mrf.mxu1 }
 0x1a1   :  { %295 = vst.msk [vmem:[%s498_s4 + $0x30] sm:$0xff] %vm288_vm1, %v372_v47 }
 0x1a2   :  { %v273_v48 = vpop.f32.mrf.mxu1 }
 0x1a3   :  { %293 = vst.msk [vmem:[%s498_s4 + $0x20] sm:$0xff] %vm288_vm1, %v273_v48 }
 0x1a4   :  { %v373_v49 = vpop.f32.mrf.mxu1 }
 0x1a5   :  { %296 = vst.msk [vmem:[%s498_s4 + $0x38] sm:$0xff] %vm288_vm1, %v373_v49 }
 0x1a6   :  { %v276_v50 = vpop.f32.mrf.mxu1 }
 0x1a7   :  { %294 = vst.msk [vmem:[%s498_s4 + $0x28] sm:$0xff] %vm288_vm1, %v276_v50 }

</bundles_post_ra>
